<compile_context>
chip_gen: v7x
topology: tpu7x:2x2x1
jax: 0.10.0
libtpu: 0.0.40
codegen_flags: <defaults>
</compile_context>

<pallas_src>
import functools

import jax
import jax.numpy as jnp
import numpy as np
from jax.experimental import pallas as pl
from jax.experimental.pallas import tpu as pltpu


def _kernel_lane_aligned(x_ref, w_ref, g_ref, b_ref, o_ref, *, q, eps):
    """Path for q % 128 == 0: one MXU matmul, stats via XLU reductions on
    static lane-aligned group slices, VPU broadcast, lane-dense stores."""
    x = x_ref[...]
    w = w_ref[...]
    y = jnp.dot(x, w, preferred_element_type=jnp.float32)          # (TM, 4q)
    inv_q = 1.0 / float(q)
    for k in range(4):                                             # static unroll
        lo = k * q                                                 # multiple of 128
        yk = y[:, lo:lo + q]
        mu = jnp.sum(yk, axis=-1, keepdims=True) * inv_q           # (TM, 1)
        ex2 = jnp.sum(yk * yk, axis=-1, keepdims=True) * inv_q     # (TM, 1)
        var = jnp.maximum(ex2 - mu * mu, 0.0)                      # clamp >= 0
        inv = jax.lax.rsqrt(var + eps)
        o_ref[:, lo:lo + q] = (
            (yk - mu) * (inv * g_ref[:, lo:lo + q]) + b_ref[:, lo:lo + q]
        ).astype(o_ref.dtype)


def _kernel_sel(x_ref, w_ref, g_ref, b_ref, s_ref, st_ref, o_ref, *, q, eps):
    """Fallback for q not a multiple of 128 (small decoder stages): grouped
    LayerNorm stats via tiny 0/1 segment-sum matmuls, one full-width store."""
    x = x_ref[...]
    w = w_ref[...]
    y = jnp.dot(x, w, preferred_element_type=jnp.float32)              # (TM, 4q)

    sel = s_ref[...]                                                    # (4q, 4)
    sel_t = st_ref[...]                                                 # (4, 4q)

    sums = jnp.dot(y, sel, preferred_element_type=jnp.float32)          # (TM, 4)
    sqsums = jnp.dot(y * y, sel, preferred_element_type=jnp.float32)    # (TM, 4)
    inv_q = 1.0 / float(q)
    mu_g = sums * inv_q
    var_g = jnp.maximum(sqsums * inv_q - mu_g * mu_g, 0.0)
    inv_g = jax.lax.rsqrt(var_g + eps)

    mu_full = jnp.dot(mu_g, sel_t, preferred_element_type=jnp.float32)   # (TM, 4q)
    inv_full = jnp.dot(inv_g, sel_t, preferred_element_type=jnp.float32)

    scale = inv_full * g_ref[...]
    o_ref[...] = ((y - mu_full) * scale + b_ref[...]).astype(o_ref.dtype)


def _round_up(v, m):
    return ((v + m - 1) // m) * m


def _choose_block_m(tokens, cin, q, in_bytes, out_bytes,
                    *, budget_bytes=24 << 20, cap=512):
    """Largest token tile keeping (double-buffered I/O tiles + resident weight
    + ~5 live f32 intermediates of output width) inside a budget that is safe
    on v7x (64 MiB/TC) as well as v5e/v6e (128 MiB).  Also keeps >= 2 grid
    blocks whenever there is enough work so v7x's 2 TensorCores both run."""
    c_out = 4 * q
    weight_bytes = 2 * cin * c_out * in_bytes           # double-buffered weight
    row_bytes = 2 * (cin * in_bytes + c_out * out_bytes) + 5 * c_out * 4
    avail = max(budget_bytes - weight_bytes, 2 << 20)
    bm = avail // row_bytes
    bm = min(int(bm), cap, _round_up(tokens, 8))
    if tokens > 8:
        bm = min(bm, _round_up(pl.cdiv(tokens, 2), 8))  # >= 2 blocks (megacore)
    bm = max(8, (bm // 8) * 8)                          # sublane-aligned
    return bm


def patch_expand_pallas(x, w, gamma, beta, input_resolution, *, block_m=None, eps=1e-5):
    """x: (B, H*W, Cin); w: (2*Cin, Cin) torch-style Linear weight (out, in)."""
    H, W = input_resolution
    B, L, Cin = x.shape
    assert L == H * W, "input feature has wrong size"
    C = 2 * Cin
    q = C // 4  # output channel count (= Cin // 2)

    # Fold the chunk/stack/concat permutation into the weight: output group k
    # (sub-pixel position (dh,dw), k = 2*dh+dw) uses expand-chunk chunk_map[k].
    chunk_map = (0, 2, 1, 3)
    w_perm = jnp.concatenate(
        [w[c * q:(c + 1) * q, :].T for c in chunk_map], axis=1
    ).astype(x.dtype)                                   # (Cin, 4*q), bf16 if model is bf16

    gamma_t = jnp.tile(gamma.reshape(1, q).astype(jnp.float32), (1, 4))  # (1, 4q)
    beta_t = jnp.tile(beta.reshape(1, q).astype(jnp.float32), (1, 4))    # (1, 4q)

    tokens = B * H * W
    in_bytes = jnp.dtype(x.dtype).itemsize
    out_bytes = in_bytes
    if block_m is None:
        block_m = _choose_block_m(tokens, Cin, q, in_bytes, out_bytes)
    num_blocks = pl.cdiv(tokens, block_m)

    # No zero-pad / post-slice: Pallas masks the ragged last block; LayerNorm
    # is row-local so out-of-bounds rows never affect valid rows.
    x2d = x.reshape(tokens, Cin)

    lane_aligned = (q % 128 == 0)
    if lane_aligned:
        kernel = functools.partial(_kernel_lane_aligned, q=q, eps=eps)
        extra_specs = []
        extra_args = ()
        aux_flops = 0
    else:
        sel_np = np.zeros((4 * q, 4), dtype=np.float32)
        for k in range(4):
            sel_np[k * q:(k + 1) * q, k] = 1.0
        sel = jnp.asarray(sel_np)        # (4q, 4)
        sel_t = jnp.asarray(sel_np.T)    # (4, 4q)
        kernel = functools.partial(_kernel_sel, q=q, eps=eps)
        extra_specs = [
            pl.BlockSpec((4 * q, 4), lambda i: (0, 0)),
            pl.BlockSpec((4, 4 * q), lambda i: (0, 0)),
        ]
        extra_args = (sel, sel_t)
        aux_flops = 4 * (2 * tokens * 4 * q * 4)

    cost = pl.CostEstimate(
        flops=2 * tokens * Cin * 4 * q + aux_flops,
        transcendentals=4 * tokens,
        bytes_accessed=(tokens * Cin * in_bytes
                        + Cin * 4 * q * in_bytes
                        + tokens * 4 * q * out_bytes
                        + 2 * 4 * q * 4),
    )

    y = pl.pallas_call(
        kernel,
        out_shape=jax.ShapeDtypeStruct((tokens, 4 * q), x.dtype),
        grid=(num_blocks,),
        in_specs=[
            pl.BlockSpec((block_m, Cin), lambda i: (i, 0)),
            pl.BlockSpec((Cin, 4 * q), lambda i: (0, 0)),
            pl.BlockSpec((1, 4 * q), lambda i: (0, 0)),
            pl.BlockSpec((1, 4 * q), lambda i: (0, 0)),
            *extra_specs,
        ],
        out_specs=pl.BlockSpec((block_m, 4 * q), lambda i: (i, 0)),
        compiler_params=pltpu.CompilerParams(
            dimension_semantics=("parallel",),
            vmem_limit_bytes=32 << 20,        # safe on v7x (64 MiB) and v5e/v6e
        ),
        cost_estimate=cost,
    )(x2d, w_perm, gamma_t, beta_t, *extra_args)

    # Glue: pixel-shuffle spatial interleave (pure layout, no compute).
    # TODO(synk): fold this layout transpose into the output index_map or fuse
    # with the downstream consumer to save one output HBM round trip.
    y = y.reshape(B, H, W, 2, 2, q)                 # (B, H, W, dh, dw, q)
    y = jnp.transpose(y, (0, 1, 3, 2, 4, 5))        # (B, H, dh, W, dw, q)
    y = y.reshape(B, 2 * H, 2 * W, q)
    return y.reshape(B, 4 * H * W, q)


def patch_expand_reference(x, w, gamma, beta, input_resolution, *, eps=1e-5):
    """Pure-JAX line-by-line transcription of the PyTorch forward."""
    H, W = input_resolution
    B, L, Cin = x.shape
    y = jnp.einsum("blc,oc->blo", x, w)             # Linear, no bias
    C = 2 * Cin
    q = C // 4
    y = y.reshape(B, H, W, C)
    x0 = y[..., 0 * q:1 * q]
    x2 = y[..., 1 * q:2 * q]
    x1 = y[..., 2 * q:3 * q]
    x3 = y[..., 3 * q:4 * q]
    st = jnp.stack((x0, x1, x2, x3), axis=-1)       # (B, H, W, q, 4)
    z = st.reshape(B, H, W, C)                      # chunk along -2 + concat + squeeze
    z = jnp.transpose(z, (0, 3, 1, 2))              # b c h w
    z = z.reshape(B, q, 2, 2, H, W)                 # pixel_shuffle(2)
    z = jnp.transpose(z, (0, 1, 4, 2, 5, 3))
    z = z.reshape(B, q, 2 * H, 2 * W)
    z = jnp.transpose(z, (0, 2, 3, 1))              # b h w c
    z = z.reshape(B, 4 * H * W, q)
    mu = jnp.mean(z, axis=-1, keepdims=True)
    var = jnp.mean(jnp.square(z - mu), axis=-1, keepdims=True)
    return (z - mu) / jnp.sqrt(var + eps) * gamma + beta


if __name__ == "__main__":
    # Small shapes consistent with the module: input_resolution=(8,8), dim=32, B=2.
    B, H, W, dim = 2, 8, 8, 32
    key = jax.random.PRNGKey(0)
    kx, kw, kg, kb = jax.random.split(key, 4)

    x = jax.random.normal(kx, (B, H * W, dim), dtype=jnp.float32)
    # nn.Linear(dim, 2*dim, bias=False) weight: (2*dim, dim)
    w = jax.random.normal(kw, (2 * dim, dim), dtype=jnp.float32) * 0.05
    # LayerNorm(dim // 2) affine params (deterministic, non-trivial)
    gamma = 1.0 + 0.1 * jax.random.normal(kg, (dim // 2,), dtype=jnp.float32)
    beta = 0.1 * jax.random.normal(kb, (dim // 2,), dtype=jnp.float32)

    out = patch_expand_pallas(x, w, gamma, beta, (H, W))
    out = jax.block_until_ready(out)

    ref = patch_expand_reference(x, w, gamma, beta, (H, W))
    np.testing.assert_allclose(np.asarray(out), np.asarray(ref), rtol=5e-4, atol=5e-4)
    assert out.shape == (B, 4 * H * W, dim // 2)

    print("KERNEL_OK")
</pallas_src>

<mosaic_0001>
module attributes {stable_mosaic.version = 11 : i64} {
  func.func @_kernel_sel(%arg0: i32, %arg1: memref<64x32xf32, #tpu.memory_space<vmem>>, %arg2: memref<32x64xf32, #tpu.memory_space<vmem>>, %arg3: memref<1x64xf32, #tpu.memory_space<vmem>>, %arg4: memref<1x64xf32, #tpu.memory_space<vmem>>, %arg5: memref<64x4xf32, #tpu.memory_space<vmem>>, %arg6: memref<4x64xf32, #tpu.memory_space<vmem>>, %arg7: memref<64x64xf32, #tpu.memory_space<vmem>>) attributes {dimension_semantics = [#tpu.dimension_semantics<parallel>], iteration_bounds = array<i64: 2>, scalar_prefetch = 0 : i64, scratch_operands = 0 : i64, tpu.core_type = #tpu.core_type<tc>, window_params = [{transform_indices = @transform_0, window_bounds = array<i64: 64, 32>}, {pipeline_mode = #tpu.pipeline_mode<synchronous>, transform_indices = @transform_1, window_bounds = array<i64: 32, 64>}, {pipeline_mode = #tpu.pipeline_mode<synchronous>, transform_indices = @transform_2, window_bounds = array<i64: 1, 64>}, {pipeline_mode = #tpu.pipeline_mode<synchronous>, transform_indices = @transform_3, window_bounds = array<i64: 1, 64>}, {pipeline_mode = #tpu.pipeline_mode<synchronous>, transform_indices = @transform_4, window_bounds = array<i64: 64, 4>}, {pipeline_mode = #tpu.pipeline_mode<synchronous>, transform_indices = @transform_5, window_bounds = array<i64: 4, 64>}, {transform_indices = @transform_6, window_bounds = array<i64: 64, 64>}]} {
    %c0 = arith.constant 0 : index
    %c0_0 = arith.constant 0 : index
    %0 = vector.load %arg1[%c0, %c0_0] : memref<64x32xf32, #tpu.memory_space<vmem>>, vector<64x32xf32>
    %c0_1 = arith.constant 0 : index
    %c0_2 = arith.constant 0 : index
    %1 = vector.load %arg2[%c0_1, %c0_2] : memref<32x64xf32, #tpu.memory_space<vmem>>, vector<32x64xf32>
    %cst = arith.constant dense<0.000000e+00> : vector<64x64xf32>
    %2 = tpu.matmul %0, %1, %cst {dimension_numbers = #tpu.dot_dimension_numbers<[1], [0], [0], [1], [0, 0, 1, 1], [], []>} : vector<64x32xf32>, vector<32x64xf32>, vector<64x64xf32> -> vector<64x64xf32>
    %c0_3 = arith.constant 0 : index
    %c0_4 = arith.constant 0 : index
    %3 = vector.load %arg5[%c0_3, %c0_4] : memref<64x4xf32, #tpu.memory_space<vmem>>, vector<64x4xf32>
    %c0_5 = arith.constant 0 : index
    %c0_6 = arith.constant 0 : index
    %4 = vector.load %arg6[%c0_5, %c0_6] : memref<4x64xf32, #tpu.memory_space<vmem>>, vector<4x64xf32>
    %cst_7 = arith.constant dense<0.000000e+00> : vector<64x4xf32>
    %5 = tpu.matmul %2, %3, %cst_7 {dimension_numbers = #tpu.dot_dimension_numbers<[1], [0], [0], [1], [0, 0, 1, 1], [], []>} : vector<64x64xf32>, vector<64x4xf32>, vector<64x4xf32> -> vector<64x4xf32>
    %6 = arith.mulf %2, %2 : vector<64x64xf32>
    %cst_8 = arith.constant dense<0.000000e+00> : vector<64x4xf32>
    %7 = tpu.matmul %6, %3, %cst_8 {dimension_numbers = #tpu.dot_dimension_numbers<[1], [0], [0], [1], [0, 0, 1, 1], [], []>} : vector<64x64xf32>, vector<64x4xf32>, vector<64x4xf32> -> vector<64x4xf32>
    %cst_9 = arith.constant 6.250000e-02 : f32
    %8 = vector.broadcast %cst_9 : f32 to vector<64x4xf32>
    %9 = arith.mulf %5, %8 : vector<64x4xf32>
    %cst_10 = arith.constant 6.250000e-02 : f32
    %10 = vector.broadcast %cst_10 : f32 to vector<64x4xf32>
    %11 = arith.mulf %7, %10 : vector<64x4xf32>
    %12 = arith.mulf %9, %9 : vector<64x4xf32>
    %13 = arith.subf %11, %12 : vector<64x4xf32>
    %cst_11 = arith.constant 0.000000e+00 : f32
    %14 = vector.broadcast %cst_11 : f32 to vector<64x4xf32>
    %15 = arith.maximumf %13, %14 : vector<64x4xf32>
    %cst_12 = arith.constant 9.99999974E-6 : f32
    %16 = vector.broadcast %cst_12 : f32 to vector<64x4xf32>
    %17 = arith.addf %15, %16 : vector<64x4xf32>
    %18 = math.rsqrt %17 : vector<64x4xf32>
    %cst_13 = arith.constant dense<0.000000e+00> : vector<64x64xf32>
    %19 = tpu.matmul %9, %4, %cst_13 {dimension_numbers = #tpu.dot_dimension_numbers<[1], [0], [0], [1], [0, 0, 1, 1], [], []>} : vector<64x4xf32>, vector<4x64xf32>, vector<64x64xf32> -> vector<64x64xf32>
    %cst_14 = arith.constant dense<0.000000e+00> : vector<64x64xf32>
    %20 = tpu.matmul %18, %4, %cst_14 {dimension_numbers = #tpu.dot_dimension_numbers<[1], [0], [0], [1], [0, 0, 1, 1], [], []>} : vector<64x4xf32>, vector<4x64xf32>, vector<64x64xf32> -> vector<64x64xf32>
    %c0_15 = arith.constant 0 : index
    %c0_16 = arith.constant 0 : index
    %21 = vector.load %arg3[%c0_15, %c0_16] : memref<1x64xf32, #tpu.memory_space<vmem>>, vector<1x64xf32>
    %22 = vector.broadcast %21 : vector<1x64xf32> to vector<64x64xf32>
    %23 = arith.mulf %20, %22 : vector<64x64xf32>
    %24 = arith.subf %2, %19 : vector<64x64xf32>
    %25 = arith.mulf %24, %23 : vector<64x64xf32>
    %c0_17 = arith.constant 0 : index
    %c0_18 = arith.constant 0 : index
    %26 = vector.load %arg4[%c0_17, %c0_18] : memref<1x64xf32, #tpu.memory_space<vmem>>, vector<1x64xf32>
    %27 = vector.broadcast %26 : vector<1x64xf32> to vector<64x64xf32>
    %28 = arith.addf %25, %27 : vector<64x64xf32>
    %c0_19 = arith.constant 0 : index
    %c0_20 = arith.constant 0 : index
    %29 = vector.load %arg7[%c0_19, %c0_20] : memref<64x64xf32, #tpu.memory_space<vmem>>, vector<64x64xf32>
    tpu.vector_store %arg7[%c0_19, %c0_20], %28 {strides = array<i32>} : memref<64x64xf32, #tpu.memory_space<vmem>>, vector<64x64xf32>,
    return
  }
  func.func @transform_0(%arg0: i32) -> (i32, i32) {
    %c0_i32 = arith.constant 0 : i32
    %c0_i32_0 = arith.constant 0 : i32
    return %arg0, %c0_i32 : i32, i32
  }
  func.func @transform_1(%arg0: i32) -> (i32, i32) {
    %c0_i32 = arith.constant 0 : i32
    %c0_i32_0 = arith.constant 0 : i32
    %c0_i32_1 = arith.constant 0 : i32
    return %c0_i32, %c0_i32_0 : i32, i32
  }
  func.func @transform_2(%arg0: i32) -> (i32, i32) {
    %c0_i32 = arith.constant 0 : i32
    %c0_i32_0 = arith.constant 0 : i32
    %c0_i32_1 = arith.constant 0 : i32
    return %c0_i32, %c0_i32_0 : i32, i32
  }
  func.func @transform_3(%arg0: i32) -> (i32, i32) {
    %c0_i32 = arith.constant 0 : i32
    %c0_i32_0 = arith.constant 0 : i32
    %c0_i32_1 = arith.constant 0 : i32
    return %c0_i32, %c0_i32_0 : i32, i32
  }
  func.func @transform_4(%arg0: i32) -> (i32, i32) {
    %c0_i32 = arith.constant 0 : i32
    %c0_i32_0 = arith.constant 0 : i32
    %c0_i32_1 = arith.constant 0 : i32
    return %c0_i32, %c0_i32_0 : i32, i32
  }
  func.func @transform_5(%arg0: i32) -> (i32, i32) {
    %c0_i32 = arith.constant 0 : i32
    %c0_i32_0 = arith.constant 0 : i32
    %c0_i32_1 = arith.constant 0 : i32
    return %c0_i32, %c0_i32_0 : i32, i32
  }
  func.func @transform_6(%arg0: i32) -> (i32, i32) {
    %c0_i32 = arith.constant 0 : i32
    %c0_i32_0 = arith.constant 0 : i32
    return %arg0, %c0_i32 : i32, i32
  }
}

</mosaic_0001>

<bundles_post_ra>
// kernel: tpu_custom_call.1
= control target key start
LH: loop header
LB: loop body
LE: loop exit
PB: predicated region body
PF: predicated region fallthrough
CT: control target
= control target key end

     0   :  { %s1438_s21 = smov 0   ;;  %s1631_s0 = inlined_call_operand.vmem [shape: f32[128,32], index: 0, kind: input, shape index: {}]   ;;  %s1632_s1 = inlined_call_operand.vmem [shape: f32[32,64], index: 1, kind: input, shape index: {}]   ;;  %s1633_s2 = inlined_call_operand.vmem [shape: f32[1,64], index: 2, kind: input, shape index: {}]   ;;  %s1634_s3 = inlined_call_operand.vmem [shape: f32[1,64], index: 3, kind: input, shape index: {}]   ;;  %s1635_s4 = inlined_call_operand.vmem [shape: f32[64,4], index: 4, kind: input, shape index: {}]   ;;  %s1636_s5 = inlined_call_operand.vmem [shape: f32[4,64], index: 5, kind: input, shape index: {}]   ;;  %s1637_s6 = inlined_call_operand.vmem [shape: f32[128,64], index: 6, kind: output, shape index: {}]  }
   0x1 LB: > { %s1102_s22 = sadd.s32 4294967295, %s1401_s21   ;;  %p1106_p0 = scmp.ge.s32.totalorder %s1401_s21, 1  ;;  %s1401_s21 = sphi %s1438_s21, %s16_s21  }
   0x2   : > { %p213_p1 = scmp.lt.s32.totalorder %s1401_s21, 3 }
   0x4   : > { %p214_p2 = pnand %p1106_p0, %p213_p1 }
   0x5   : > { %v263_v0 = vld [vmem:[%s1632_s1] sm:$0xff] (!%p214_p2)  ;;  %v264_v1 = vld [vmem:[%s1632_s1 + $0x8] sm:$0xff] (!%p214_p2)  ;;  %v265_v2 = vld [vmem:[%s1632_s1 + $0x10] sm:$0xff] (!%p214_p2)  ;;  %s1107_s29 = sshll.u32 (!%p214_p2), %s1102_s22, 3  ;;  %vm267_vm0 = vcmask (!%p214_p2), 261120   ;;  %vm406_vm1 = vcmask (!%p214_p2), 523264  }
   0x6   : > { %217 = sbr.rel (%p214_p2) target bundleno = 701 (0x2bd), region = 44  ;;  %v1323_v3 = vpack.c.bf16 (!%p214_p2), %v264_v1, %v263_v0  ;;  %v266_v4 = vld [vmem:[%s1632_s1 + $0x18] sm:$0xff] (!%p214_p2)  ;;  %p244_p3 = scmp.lt.s32.totalorder (!%p214_p2), %s1107_s29, 15  ;;  %v397_v5 = vld [vmem:[%s1635_s4] sm:$0xff] (!%p214_p2)  ;;  %v398_v6 = vld [vmem:[%s1635_s4 + $0x8] sm:$0xff] (!%p214_p2)  ;;  %vm754_vm2 = vcmask (!%p214_p2), 1043456  }
   0x7   : > { %v1327_v7 = vpack.c.bf16 (!%p214_p2), %v266_v4, %v265_v2  ;;  %v1331_v8 = vpack.c.bf16 (!%p214_p2), %v398_v6, %v397_v5  ;;  %v399_v9 = vld [vmem:[%s1635_s4 + $0x10] sm:$0xff] (!%p214_p2)  ;;  %v400_v10 = vld [vmem:[%s1635_s4 + $0x18] sm:$0xff] (!%p214_p2)  ;;  %v401_v12 = vld [vmem:[%s1635_s4 + $0x20] sm:$0xff] (!%p214_p2)  ;;  %vm729_vm3 = vcmask (!%p214_p2), 31744  }
   0x8   : > { %1324 = vmatprep.subr.bf16.mxu0 (!%p214_p2), %v1323_v3  ;;  %v1472_v11 = vpack.c.bf16 (!%p214_p2), %v400_v10, %v399_v9  ;;  %v402_v13 = vld [vmem:[%s1635_s4 + $0x28] sm:$0xff] (!%p214_p2)  ;;  %v403_v16 = vld [vmem:[%s1635_s4 + $0x30] sm:$0xff] (!%p214_p2)  ;;  %v404_v17 = vld [vmem:[%s1635_s4 + $0x38] sm:$0xff] (!%p214_p2) }
   0x9   : > { %1326 = vmatpush3.bf16.msra.mxu0 (!%p214_p2), %v1323_v3  ;;  %1332 = vmatprep.subr.bf16.mxu1 (!%p214_p2), %v1331_v8  ;;  %v1339_v14 = vpack.c.bf16 (!%p214_p2), %v402_v13, %v401_v12  ;;  %v1343_v20 = vpack.c.bf16 (!%p214_p2), %v404_v17, %v403_v16  ;;  %v405_v42 = vld [vmem:[%s1636_s5] sm:$0xf] (!%p214_p2) }
   0xa   : > { %1328 = vmatprep.subr.bf16.mxu0 (!%p214_p2), %v1327_v7  ;;  %1334 = vmatpush3.bf16.msra.mxu1 (!%p214_p2), %v1331_v8 }
   0xb   : > { %1336 = vmatprep.subr.bf16.mxu1 (!%p214_p2), %v1472_v11 }
   0xd   : > { %s1639_s29 = smov (!%p244_p3, %s1107_s29), 15  ;;  %1330 = vmatpush3.bf16.msra.mxu0 %v1327_v7 }
   0xe   : > { %s1108_s20 = sshll.u32 %s1639_s29, 3  ;;  %1348 = vmatprep.subr.bf16.mxu0 %v1331_v8  ;;  %1338 = vmatpush3.bf16.msra.mxu1 %v1472_v11 }
   0xf   : > { %s1486_s24 = scalar_lea.vmem %s1631_s0, %s1108_s20  ;;  %1340 = vmatprep.subr.bf16.mxu1 %v1339_v14  ;;  %s1610_s14 = scalar_lea.vmem %s1637_s6, %s1108_s20 }
  0x10   : > { %v255_v15 = vld [vmem:[%s1486_s24] sm:$0xff]  ;;  %v256_v18 = vld [vmem:[%s1486_s24 + $0x8] sm:$0xff]  ;;  %v257_v19 = vld [vmem:[%s1486_s24 + $0x10] sm:$0xff] }
  0x11   : > { %1227 = vmatprep.mubr.msk.f32.mxu0 %vm267_vm0, %v255_v15  ;;  %v258_v21 = vld [vmem:[%s1486_s24 + $0x18] sm:$0xff]  ;;  %v259_v22 = vld [vmem:[%s1486_s24 + $0x20] sm:$0xff]  ;;  %v260_v23 = vld [vmem:[%s1486_s24 + $0x28] sm:$0xff] }
  0x12   : > { %1228 = vmatmul.mubr.msk.f32.vlgmr.msra.gmra.mrb[0].mxu0 %vm267_vm0, %v256_v18  ;;  %1342 = vmatpush3.bf16.msra.mxu1 %v1339_v14  ;;  %v261_v24 = vld [vmem:[%s1486_s24 + $0x30] sm:$0xff]  ;;  %v262_v25 = vld [vmem:[%s1486_s24 + $0x38] sm:$0xff] }
  0x13   : > { %1230 = vmatprep.mubr.msk.f32.mxu0 %vm267_vm0, %v257_v19  ;;  %1350 = vmatpush3.bf16.msra.mxu0 %v1331_v8 }
  0x14   : > { %1352 = vmatprep.subr.bf16.mxu0 %v1472_v11  ;;  %1344 = vmatprep.subr.bf16.mxu1 %v1343_v20 }
  0x16   : > { %1231 = vmatmul.mubr.msk.f32.gmra.mrb[2].mxu0 %vm267_vm0, %v258_v21  ;;  %1346 = vmatpush3.bf16.msra.mxu1 %v1343_v20 }
  0x17   : > { %1233 = vmatprep.mubr.msk.f32.mxu0 %vm267_vm0, %v259_v22  ;;  %1354 = vmatpush3.bf16.msra.mxu0 %v1472_v11 }
  0x18   : > { %1356 = vmatprep.subr.bf16.mxu0 %v1339_v14  ;;  %1363 = vmatprep.subr.bf16.mxu1 %v1331_v8 }
  0x1a   : > { %1234 = vmatmul.mubr.msk.f32.gmra.mrb[4].mxu0 %vm267_vm0, %v260_v23 }
  0x1b   : > { %1236 = vmatprep.mubr.msk.f32.mxu0 %vm267_vm0, %v261_v24  ;;  %1358 = vmatpush3.bf16.msra.mxu0 %v1339_v14 }
  0x1c   : > { %1360 = vmatprep.subr.bf16.mxu0 %v1343_v20 }
  0x1e   : > { %1237 = vmatmul.mubr.msk.f32.gmra.mrb[6].mxu0 %vm267_vm0, %v262_v25 }
  0x1f   : > { %1362 = vmatpush3.bf16.msra.mxu0 %v1343_v20 }
  0x20   : > { %1309 = vmatprep.subr.msk.mxu0 %vm754_vm2, %v405_v42 }
  0xe5   : > { %v1514_v26 = vpop.f32.mrb[0].mxu0 }
  0xe6   : > { %v1516_v27 = vpop.f32.mrb[1].mxu0  ;;  %v537_v29 = vmul.f32 %v1514_v26, %v1514_v26 }
  0xe7   : > { %v536_v28 = vmul.f32 %v1516_v27, %v1516_v27  ;;  %1255 = vmatprep.mubr.msk.f32.mxu1 %vm406_vm1, %v1516_v27 }
  0xe8   : > { %1256 = vmatmul.mubr.msk.f32.vlgmr.msra.gmra.mrb[0].mxu1 %vm406_vm1, %v1514_v26 }
  0xe9   : > { %1367 = vmatpush3.bf16.msra.mxu1 %v1331_v8  ;;  %v1526_v30 = vpop.f32.mrb[2].mxu0  ;;  %1283 = vmatprep.mubr.msk.f32.mxu0 %vm406_vm1, %v536_v28 }
  0xea   : > { %v1529_v31 = vpop.f32.mrb[3].mxu0  ;;  %1284 = vmatmul.mubr.msk.f32.vlgmr.msra.gmra.mrb[8].mxu0 %vm406_vm1, %v537_v29  ;;  %1364 = vmatprep.subr.bf16.mxu1 %v1472_v11  ;;  %v539_v33 = vmul.f32 %v1526_v30, %v1526_v30 }
  0xeb   : > { %v538_v32 = vmul.f32 %v1529_v31, %v1529_v31  ;;  %1258 = vmatprep.mubr.msk.f32.mxu1 %vm406_vm1, %v1529_v31  ;;  %1310 = vmatpush3.msk.msra.mxu0 %vm754_vm2, %v405_v42 }
  0xec   : > { %1259 = vmatmul.mubr.msk.f32.gmra.mrb[2].mxu1 %vm406_vm1, %v1526_v30 }
  0xed   : > { %1368 = vmatpush3.bf16.msra.mxu1 %v1472_v11  ;;  %v1542_v34 = vpop.f32.mrb[4].mxu0  ;;  %1286 = vmatprep.mubr.msk.f32.mxu0 %vm406_vm1, %v538_v32 }
  0xee   : > { %v1545_v35 = vpop.f32.mrb[5].mxu0  ;;  %1287 = vmatmul.mubr.msk.f32.gmra.mrb[10].mxu0 %vm406_vm1, %v539_v33  ;;  %1365 = vmatprep.subr.bf16.mxu1 %v1339_v14  ;;  %v541_v37 = vmul.f32 %v1542_v34, %v1542_v34 }
  0xef   : > { %v540_v36 = vmul.f32 %v1545_v35, %v1545_v35  ;;  %1261 = vmatprep.mubr.msk.f32.mxu1 %vm406_vm1, %v1545_v35 }
  0xf0   : > { %1262 = vmatmul.mubr.msk.f32.gmra.mrb[4].mxu1 %vm406_vm1, %v1542_v34 }
  0xf1   : > { %1369 = vmatpush3.bf16.msra.mxu1 %v1339_v14  ;;  %v1556_v38 = vpop.f32.mrb[6].mxu0  ;;  %1289 = vmatprep.mubr.msk.f32.mxu0 %vm406_vm1, %v540_v36 }
  0xf2   : > { %v1559_v39 = vpop.f32.mrb[7].mxu0  ;;  %1290 = vmatmul.mubr.msk.f32.gmra.mrb[12].mxu0 %vm406_vm1, %v541_v37  ;;  %1366 = vmatprep.subr.bf16.mxu1 %v1343_v20  ;;  %v543_v41 = vmul.f32 %v1556_v38, %v1556_v38 }
  0xf3   : > { %v542_v40 = vmul.f32 %v1559_v39, %v1559_v39  ;;  %1264 = vmatprep.mubr.msk.f32.mxu1 %vm406_vm1, %v1559_v39 }
  0xf4   : > { %1265 = vmatmul.mubr.msk.f32.gmra.mrb[6].mxu1 %vm406_vm1, %v1556_v38 }
  0xf5   : > { %1370 = vmatpush3.bf16.msra.mxu1 %v1343_v20  ;;  %1292 = vmatprep.mubr.msk.f32.mxu1 %vm406_vm1, %v542_v40 }
  0xf6   : > { %1295 = vmatprep.subr.msk.mxu1 %vm754_vm2, %v405_v42 }
  0xf8   : > { %1293 = vmatmul.mubr.msk.f32.vlgmr.msra.gmra.mrb[8].mxu1 %vm406_vm1, %v543_v41 }
  0xf9   : > { %1296 = vmatpush3.msk.msra.mxu1 %vm754_vm2, %v405_v42 }
 0x1bb   : > { %v1257_v43 = vpop.f32.mrb[0].mxu1 }
 0x1bc   : > { %v674_v44 = vmul.f32 0.0625, %v1257_v43  ;;  %v497_v45 = vpop.f32.mrb[1].mxu1 }
 0x1bd   : > { %v673_v46 = vmul.f32 0.0625, %v497_v45  ;;  %v1285_v47 = vpop.f32.mrb[8].mxu0 }
 0x1be   : > { %v690_v48 = vmul.f32 %v674_v44, %v674_v44  ;;  %v682_v49 = vmul.f32 0.0625, %v1285_v47  ;;  %v634_v50 = vpop.f32.mrb[9].mxu0 }
 0x1bf   : > { %v689_v51 = vmul.f32 %v673_v46, %v673_v46  ;;  %v681_v52 = vmul.f32 0.0625, %v634_v50  ;;  %v1260_v53 = vpop.f32.mrb[2].mxu1  ;;  %1297 = vmatprep.mubr.msk.f32.mxu1 %vm729_vm3, %v673_v46 }
 0x1c0   : > { %v698_v54 = vsub.f32 %v682_v49, %v690_v48  ;;  %v676_v55 = vmul.f32 0.0625, %v1260_v53  ;;  %v507_v56 = vpop.f32.mrb[3].mxu1  ;;  %1298 = vmatmul.mubr.msk.f32.vlgmr.msra.gmra.mrb[10].mxu1 %vm729_vm3, %v674_v44 }
 0x1c1   : > { %v697_v57 = vsub.f32 %v681_v52, %v689_v51  ;;  %v675_v58 = vmul.f32 0.0625, %v507_v56  ;;  %v1288_v59 = vpop.f32.mrb[10].mxu0 }
 0x1c2   : > { %v706_v60 = vmax.f32 %v698_v54, 0.0  ;;  %v692_v61 = vmul.f32 %v676_v55, %v676_v55  ;;  %v684_v62 = vmul.f32 0.0625, %v1288_v59  ;;  %v644_v63 = vpop.f32.mrb[11].mxu0 }
 0x1c3   : > { %v705_v0 = vmax.f32 %v697_v57, 0.0  ;;  %v691_v1 = vmul.f32 %v675_v58, %v675_v58  ;;  %v683_v2 = vmul.f32 0.0625, %v644_v63  ;;  %v1263_v3 = vpop.f32.mrb[4].mxu1  ;;  %1300 = vmatprep.mubr.msk.f32.mxu1 %vm729_vm3, %v675_v58 }
 0x1c4   : > { %v714_v4 = vadd.f32 1e-05, %v706_v60  ;;  %v700_v5 = vsub.f32 %v684_v62, %v692_v61  ;;  %v678_v6 = vmul.f32 0.0625, %v1263_v3  ;;  %v517_v7 = vpop.f32.mrb[5].mxu1  ;;  %1301 = vmatmul.mubr.msk.f32.gmra.mrb[12].mxu1 %vm729_vm3, %v676_v55 }
 0x1c5   : > { %v713_v8 = vadd.f32 1e-05, %v705_v0  ;;  %v699_v9 = vsub.f32 %v683_v2, %v691_v1  ;;  %v677_v10 = vmul.f32 0.0625, %v517_v7  ;;  %v1291_v11 = vpop.f32.mrb[12].mxu0 }
 0x1c6   : > { %v708_v12 = vmax.f32 %v700_v5, 0.0  ;;  %v694_v13 = vmul.f32 %v678_v6, %v678_v6  ;;  %v686_v14 = vmul.f32 0.0625, %v1291_v11  ;;  %v654_v15 = vpop.f32.mrb[13].mxu0 }
 0x1c7   : > { %1379 = vrsqrt.f32 %v713_v8  ;;  %v707_v16 = vmax.f32 %v699_v9, 0.0  ;;  %v693_v17 = vmul.f32 %v677_v10, %v677_v10  ;;  %v685_v18 = vmul.f32 0.0625, %v654_v15  ;;  %v1266_v19 = vpop.f32.mrb[6].mxu1  ;;  %1303 = vmatprep.mubr.msk.f32.mxu1 %vm729_vm3, %v677_v10 }
 0x1c8   : > { %1381 = vrsqrt.f32 %v714_v4  ;;  %v716_v20 = vadd.f32 1e-05, %v708_v12  ;;  %v702_v21 = vsub.f32 %v686_v14, %v694_v13  ;;  %v680_v22 = vmul.f32 0.0625, %v1266_v19  ;;  %v527_v23 = vpop.f32.mrb[7].mxu1  ;;  %1304 = vmatmul.mubr.msk.f32.gmra.mrb[14].mxu1 %vm729_vm3, %v678_v6 }
 0x1c9   : > { %v715_v24 = vadd.f32 1e-05, %v707_v16  ;;  %v701_v25 = vsub.f32 %v685_v18, %v693_v17  ;;  %v679_v28 = vmul.f32 0.0625, %v527_v23 }
 0x1ca   : > { %v710_v29 = vmax.f32 %v702_v21, 0.0  ;;  %v696_v37 = vmul.f32 %v680_v22, %v680_v22 }
 0x1cb   : > { %1383 = vrsqrt.f32 %v715_v24  ;;  %v709_v32 = vmax.f32 %v701_v25, 0.0  ;;  %v1294_v33 = vpop.f32.mrb[8].mxu1  ;;  %1306 = vmatprep.mubr.msk.f32.mxu1 %vm729_vm3, %v679_v28  ;;  %v695_v43 = vmul.f32 %v679_v28, %v679_v28 }
 0x1cc   : > { %1385 = vrsqrt.f32 %v716_v20  ;;  %v718_v36 = vadd.f32 1e-05, %v710_v29  ;;  %v688_v40 = vmul.f32 0.0625, %v1294_v33  ;;  %v664_v41 = vpop.f32.mrb[9].mxu1  ;;  %1307 = vmatmul.mubr.msk.f32.gmra.mrb[16].mxu1 %vm729_vm3, %v680_v22 }
 0x1cd   : > { %v717_v42 = vadd.f32 1e-05, %v709_v32  ;;  %v687_v44 = vmul.f32 0.0625, %v664_v41 }
 0x1ce   : > { %v704_v45 = vsub.f32 %v688_v40, %v696_v37 }
 0x1cf   : > { %1387 = vrsqrt.f32 %v717_v42  ;;  %v703_v46 = vsub.f32 %v687_v44, %v695_v43 }
 0x1d0   : > { %1389 = vrsqrt.f32 %v718_v36  ;;  %v712_v47 = vmax.f32 %v704_v45, 0.0 }
 0x1d1   : > { %v1380_v48 = vpop.eup %1379  ;;  %v711_v49 = vmax.f32 %v703_v46, 0.0 }
 0x1d2   : > { %v1382_v50 = vpop.eup %1381  ;;  %v720_v51 = vadd.f32 1e-05, %v712_v47  ;;  %1311 = vmatprep.mubr.msk.f32.mxu0 %vm729_vm3, %v1380_v48 }
 0x1d3   : > { %v719_v52 = vadd.f32 1e-05, %v711_v49  ;;  %1312 = vmatmul.mubr.msk.f32.vlgmr.msra.gmra.mrb[14].mxu0 %vm729_vm3, %v1382_v50 }
 0x1d5   : > { %v1384_v53 = vpop.eup %1383  ;;  %1391 = vrsqrt.f32 %v719_v52 }
 0x1d6   : > { %v1386_v54 = vpop.eup %1385  ;;  %1393 = vrsqrt.f32 %v720_v51  ;;  %1314 = vmatprep.mubr.msk.f32.mxu0 %vm729_vm3, %v1384_v53 }
 0x1d7   : > { %1315 = vmatmul.mubr.msk.f32.gmra.mrb[16].mxu0 %vm729_vm3, %v1386_v54 }
 0x1d9   : > { %v1388_v55 = vpop.eup %1387 }
 0x1da   : > { %v1390_v56 = vpop.eup %1389  ;;  %1317 = vmatprep.mubr.msk.f32.mxu0 %vm729_vm3, %v1388_v55 }
 0x1db   : > { %1318 = vmatmul.mubr.msk.f32.gmra.mrb[18].mxu0 %vm729_vm3, %v1390_v56 }
 0x1df   : > { %v1392_v57 = vpop.eup %1391 }
 0x1e0   : > { %v1394_v58 = vpop.eup %1393  ;;  %1320 = vmatprep.mubr.msk.f32.mxu0 %vm729_vm3, %v1392_v57 }
 0x1e1   : > { %1321 = vmatmul.mubr.msk.f32.gmra.mrb[20].mxu0 %vm729_vm3, %v1394_v58 }
 0x293   : > { %v1299_v59 = vpop.f32.mrb[10].mxu1 }
 0x294   : > { %v1008_v60 = vsub.f32 %v1514_v26, %v1299_v59  ;;  %v824_v61 = vpop.f32.mrb[11].mxu1 }
 0x295   : > { %v1007_v62 = vsub.f32 %v1516_v27, %v824_v61  ;;  %v1153_v27 = vld [vmem:[%s1633_s2] ss:$0 sm:$0xff] }
 0x297   : > { %v1302_v63 = vpop.f32.mrb[12].mxu1 }
 0x298   : > { %v1010_v0 = vsub.f32 %v1526_v30, %v1302_v63  ;;  %v834_v1 = vpop.f32.mrb[13].mxu1 }
 0x299   : > { %v1009_v2 = vsub.f32 %v1529_v31, %v834_v1 }
 0x29b   : > { %v1305_v3 = vpop.f32.mrb[14].mxu1 }
 0x29c   : > { %v1012_v4 = vsub.f32 %v1542_v34, %v1305_v3  ;;  %v844_v5 = vpop.f32.mrb[15].mxu1  ;;  %v1154_v34 = vld [vmem:[%s1634_s3] ss:$0 sm:$0xff] }
 0x29d   : > { %v1011_v6 = vsub.f32 %v1545_v35, %v844_v5 }
 0x29f   : > { %v1308_v7 = vpop.f32.mrb[16].mxu1 }
 0x2a0   : > { %v1014_v8 = vsub.f32 %v1556_v38, %v1308_v7  ;;  %v854_v26 = vpop.f32.mrb[17].mxu1 }
 0x2a1   : > { %v1013_v9 = vsub.f32 %v1559_v39, %v854_v26 }
 0x2a6   : > { %v1313_v30 = vpop.f32.mrb[14].mxu0 }
 0x2a7   : > { %v1000_v10 = vmul.f32 %v1313_v30, %v1153_v27  ;;  %v953_v31 = vpop.f32.mrb[15].mxu0 }
 0x2a8   : > { %v999_v11 = vmul.f32 %v1153_v27, %v953_v31 }
 0x2a9   : > { %v1016_v12 = vmul.f32 %v1008_v60, %v1000_v10 }
 0x2aa   : > { %v1015_v35 = vmul.f32 %v1007_v62, %v999_v11  ;;  %v1316_v38 = vpop.f32.mrb[16].mxu0 }
 0x2ab   : > { %v1031_v39 = vadd.f32 %v1154_v34, %v1016_v12  ;;  %v1002_v13 = vmul.f32 %v1316_v38, %v1153_v27  ;;  %v963_v14 = vpop.f32.mrb[17].mxu0 }
 0x2ac   : > { %v1030_v15 = vadd.f32 %v1154_v34, %v1015_v35  ;;  %v1001_v16 = vmul.f32 %v1153_v27, %v963_v14 }
 0x2ad   : > { %1039 = vst.msk [vmem:[%s1610_s14 + $0x8] sm:$0xff] %vm406_vm1, %v1031_v39  ;;  %v1018_v17 = vmul.f32 %v1010_v0, %v1002_v13 }
 0x2ae   : > { %1038 = vst.msk [vmem:[%s1610_s14] sm:$0xff] %vm406_vm1, %v1030_v15  ;;  %v1017_v18 = vmul.f32 %v1009_v2, %v1001_v16  ;;  %v1319_v19 = vpop.f32.mrb[18].mxu0 }
 0x2af   : > { %v1033_v20 = vadd.f32 %v1154_v34, %v1018_v17  ;;  %v1004_v21 = vmul.f32 %v1319_v19, %v1153_v27  ;;  %v973_v22 = vpop.f32.mrb[19].mxu0 }
 0x2b0   : > { %v1032_v23 = vadd.f32 %v1154_v34, %v1017_v18  ;;  %v1003_v24 = vmul.f32 %v1153_v27, %v973_v22 }
 0x2b1   : > { %1041 = vst.msk [vmem:[%s1610_s14 + $0x18] sm:$0xff] %vm406_vm1, %v1033_v20  ;;  %v1020_v25 = vmul.f32 %v1012_v4, %v1004_v21 }
 0x2b2   : > { %1040 = vst.msk [vmem:[%s1610_s14 + $0x10] sm:$0xff] %vm406_vm1, %v1032_v23  ;;  %v1019_v28 = vmul.f32 %v1011_v6, %v1003_v24 }
 0x2b3   : > { %v1035_v29 = vadd.f32 %v1154_v34, %v1020_v25 }
 0x2b4   : > { %v1034_v32 = vadd.f32 %v1154_v34, %v1019_v28  ;;  %v1322_v33 = vpop.f32.mrb[20].mxu0 }
 0x2b5   : > { %1043 = vst.msk [vmem:[%s1610_s14 + $0x28] sm:$0xff] %vm406_vm1, %v1035_v29  ;;  %v1006_v36 = vmul.f32 %v1322_v33, %v1153_v27  ;;  %v983_v37 = vpop.f32.mrb[21].mxu0 }
 0x2b6   : > { %1042 = vst.msk [vmem:[%s1610_s14 + $0x20] sm:$0xff] %vm406_vm1, %v1034_v32  ;;  %v1005_v40 = vmul.f32 %v1153_v27, %v983_v37 }
 0x2b7   : > { %v1022_v41 = vmul.f32 %v1014_v8, %v1006_v36 }
 0x2b8   : > { %v1021_v42 = vmul.f32 %v1013_v9, %v1005_v40 }
 0x2b9   : > { %v1037_v43 = vadd.f32 %v1154_v34, %v1022_v41 }
 0x2ba   : > { %v1036_v44 = vadd.f32 %v1154_v34, %v1021_v42 }
 0x2bb   : > { %1045 = vst.msk [vmem:[%s1610_s14 + $0x38] sm:$0xff] %vm406_vm1, %v1037_v43 }
 0x2bc   : > { %1044 = vst.msk [vmem:[%s1610_s14 + $0x30] sm:$0xff] %vm406_vm1, %v1036_v44 }
 0x2bd PF: > { %s16_s21 = sadd.s32 1, %s1401_s21  }
 0x2be   : > { %p13_p4 = scmp.ge.s32.totalorder %s16_s21, 4  }
 0x2c0   :  { %15 = sbr.rel (!%p13_p4) target bundleno = 1 (0x1), region = 74 }

</bundles_post_ra>
